<compile_context>
chip_gen: v6e
topology: v6e:2x2x1
jax: 0.10.0
libtpu: 0.0.40
codegen_flags: <defaults>
</compile_context>

<pallas_src>
import jax
import jax.numpy as jnp
from jax.experimental import pallas as pl
from jax.experimental.pallas import tpu as pltpu


CW = 8  # narrow lane width for coors in HBM (3 real dims padded to 8)


# ------------------------- fused attn + ff kernel ----------------------------
def _block_kernel(feats_ref, coors_ref, bias_ref,
                  wq_ref, wk_ref, wv_ref, wo_ref,
                  w1_ref, b1_ref, w2_ref, b2_ref,
                  cscale_ref,
                  feats_out_ref, coors_out_ref):
    cscale = cscale_ref[0]                                   # SMEM scalar (f32)
    x_in = feats_ref[...]                                    # (R, D) bf16

    # Q/K/V projections: f32 MXU accumulation, bf16 operands for the next
    # matmul.  (1/sqrt(D) is folded into wq at trace time.)
    q = jnp.dot(x_in, wq_ref[...],
                preferred_element_type=jnp.float32).astype(jnp.bfloat16)
    k = jnp.dot(x_in, wk_ref[...],
                preferred_element_type=jnp.float32).astype(jnp.bfloat16)
    v = jnp.dot(x_in, wv_ref[...],
                preferred_element_type=jnp.float32).astype(jnp.bfloat16)

    # One dense (R, R) scores matmul for all Bt graphs in the slab.  The
    # precomputed bias carries edge/adj bias on the per-graph diagonal blocks
    # and -1e9 on cross-graph / masked positions (block-diagonal attention).
    scores = jax.lax.dot_general(q, k, (((1,), (1,)), ((), ())),
                                 preferred_element_type=jnp.float32)  # (R, R)
    scores = scores + bias_ref[...].astype(jnp.float32)

    # Single stable softmax over the whole slab (f32); divide via EUP.
    s_max = jnp.max(scores, axis=-1, keepdims=True)
    p_un = jnp.exp(scores - s_max)
    denom = jnp.sum(p_un, axis=-1, keepdims=True)
    p = p_un * pl.reciprocal(denom, approx=True)             # (R, R) f32

    # Feature update (residual).
    o = jnp.dot(p.astype(jnp.bfloat16), v, preferred_element_type=jnp.float32)
    o = jnp.dot(o.astype(jnp.bfloat16), wo_ref[...],
                preferred_element_type=jnp.float32)           # (R, D)
    x = x_in.astype(jnp.float32) + o

    # Coordinate update (residual).  Softmax rows sum to 1, so
    #   sum_j p_ij (x_i - x_j) = x_i - (p @ x)   (no rowsum reduction needed).
    cb = coors_ref[...]                                      # (R, CW) f32
    pc = jnp.dot(p, cb, preferred_element_type=jnp.float32)
    coors_out_ref[...] = cb + (cb - pc) * cscale

    # Feed-forward (residual) on the whole (R, D) slab.
    h = jnp.dot(x.astype(jnp.bfloat16), w1_ref[...],
                preferred_element_type=jnp.float32) + b1_ref[...]
    # TODO(synk): PyTorch nn.GELU defaults to erf; tanh approximation is used
    # here for a safe Mosaic lowering.
    h = jax.nn.gelu(h, approximate=True)
    y = jnp.dot(h.astype(jnp.bfloat16), w2_ref[...],
                preferred_element_type=jnp.float32) + b2_ref[...]
    feats_out_ref[...] = (x + y).astype(feats_out_ref.dtype)


# ------------------------- wrapper helpers ------------------------------------
def _pick_bt(B, N, target_rows=128, max_rows=256):
    """Pick graphs-per-step Bt (a divisor of B).

    Preferences, in order:
      * >= 2 grid steps (v7x's two TensorCores both get work; the BlockSpec
        pipeline can overlap DMA with compute), ideally >= 4,
      * per-step slab R = Bt*N capped (block-diag (R,R) scores/bias are O(R^2)),
      * R close to target_rows (fills the 128/256-wide MXU),
      * R must be 8-sublane aligned unless Bt == B (full-array block).
    """
    feasible = [d for d in range(1, B + 1)
                if B % d == 0 and ((d * N) % 8 == 0 or d == B)]
    if not feasible:
        feasible = [B]

    def key(d):
        rows, steps = d * N, B // d
        return (steps < 2, rows > max_rows, steps < 4, abs(rows - target_rows))

    return min(feasible, key=key)


def _vmem_limit_bytes():
    """Generation-aware VMEM budget (v7x: 64 MiB/TC; v5e/v6e: 128 MiB)."""
    phys = 64 * 1024 * 1024
    try:
        phys = int(getattr(pltpu.get_tpu_info(), "vmem_capacity_bytes", phys))
    except Exception:
        pass
    return min(phys * 3 // 4, 100 * 1024 * 1024)


# ------------------------- wrapper --------------------------------------------
def block_forward(inp, params, coor_changes=None):
    """Pallas equivalent of Block.forward with representative attn/ff."""
    feats, coors, mask, edges, adj_mat = inp
    B, N, D = feats.shape
    E = edges.shape[-1]
    H = params["w1"].shape[1]
    C = coors.shape[-1]

    Bt = _pick_bt(B, N)
    G = B // Bt                                  # grid length (>= 2 when B >= 2)
    R = Bt * N                                   # rows per grid step

    # ---- trace-time folding / layout plumbing ----
    inv_sqrt_d = 1.0 / float(D) ** 0.5
    wq = (params["wq"] * inv_sqrt_d).astype(jnp.bfloat16)
    wk = params["wk"].astype(jnp.bfloat16)
    wv = params["wv"].astype(jnp.bfloat16)
    wo = params["wo"].astype(jnp.bfloat16)
    w1 = params["w1"].astype(jnp.bfloat16)
    w2 = params["w2"].astype(jnp.bfloat16)
    b1 = params["b1"].astype(jnp.float32)        # (1, H)
    b2 = params["b2"].astype(jnp.float32)        # (1, D)

    # pairwise bias: edge projection + scaled adjacency + additive mask,
    # packed block-diagonally (per grid step) so the kernel runs ONE dense
    # (R, R) attention over all Bt graphs; stored bf16 to halve HBM reads.
    we = params["we"].reshape(E).astype(jnp.float32)
    bias = jnp.einsum("bqke,e->bqk", edges.astype(jnp.float32), we)
    bias = bias + adj_mat.astype(jnp.float32) * params["adj_scale"].reshape(())
    mask2d = mask[:, :, None] & mask[:, None, :]
    neg = jnp.float32(-1e9)
    bias = jnp.where(mask2d, bias, neg)                       # (B, N, N) f32
    bias_g = bias.reshape(G, Bt, N, N)
    same_graph = jnp.eye(Bt, dtype=bool)[None, :, None, :, None]
    bias_bd = jnp.where(
        same_graph,
        jnp.broadcast_to(bias_g[:, :, :, None, :], (G, Bt, N, Bt, N)),
        neg)
    bias2d = bias_bd.reshape(B * N, R).astype(jnp.bfloat16)   # (B*N, R) bf16

    feats2d = feats.astype(jnp.bfloat16).reshape(B * N, D)
    coors2d = jnp.pad(coors.astype(jnp.float32),
                      ((0, 0), (0, 0), (0, CW - C))).reshape(B * N, CW)
    cscale = params["coor_scale"].reshape(1).astype(jnp.float32)

    grid_spec = pltpu.PrefetchScalarGridSpec(
        num_scalar_prefetch=0,
        grid=(G,),
        in_specs=[
            pl.BlockSpec((R, D), lambda g: (g, 0)),            # feats (bf16)
            pl.BlockSpec((R, CW), lambda g: (g, 0)),           # coors (narrow)
            pl.BlockSpec((R, R), lambda g: (g, 0)),            # block-diag bias
            pl.BlockSpec((D, D), lambda g: (0, 0)),            # wq (pre-scaled)
            pl.BlockSpec((D, D), lambda g: (0, 0)),            # wk
            pl.BlockSpec((D, D), lambda g: (0, 0)),            # wv
            pl.BlockSpec((D, D), lambda g: (0, 0)),            # wo
            pl.BlockSpec((D, H), lambda g: (0, 0)),            # w1
            pl.BlockSpec((1, H), lambda g: (0, 0)),            # b1
            pl.BlockSpec((H, D), lambda g: (0, 0)),            # w2
            pl.BlockSpec((1, D), lambda g: (0, 0)),            # b2
            pl.BlockSpec(memory_space=pltpu.MemorySpace.SMEM),  # coor_scale
        ],
        out_specs=[
            pl.BlockSpec((R, D), lambda g: (g, 0)),            # feats out (bf16)
            pl.BlockSpec((R, CW), lambda g: (g, 0)),           # coors out (f32)
        ],
    )

    feats_out2d, coors_out2d = pl.pallas_call(
        _block_kernel,
        out_shape=(jax.ShapeDtypeStruct((B * N, D), jnp.bfloat16),
                   jax.ShapeDtypeStruct((B * N, CW), jnp.float32)),
        grid_spec=grid_spec,
        compiler_params=pltpu.CompilerParams(
            dimension_semantics=("parallel",),       # batch axis independent
            vmem_limit_bytes=_vmem_limit_bytes(),    # per-generation budget
        ),
    )(feats2d, coors2d, bias2d, wq, wk, wv, wo, w1, b1, w2, b2, cscale)

    feats_out = feats_out2d.reshape(B, N, D)
    coors_out = coors_out2d.reshape(B, N, CW)[:, :, :C]
    # NOTE: fully-masked (padding) rows still receive a uniform-softmax
    # residual update (now uniform over the packed slab); their values are
    # not meaningful either way, matching the representative attn.
    return (feats_out, coors_out, mask, edges, adj_mat)


# ------------------------- parameters -----------------------------------------
def init_params(D, E, H):
    key = jax.random.PRNGKey(42)
    ks = jax.random.split(key, 7)
    scale = 0.1
    return {
        "wq": jax.random.normal(ks[0], (D, D), jnp.float32) * scale,
        "wk": jax.random.normal(ks[1], (D, D), jnp.float32) * scale,
        "wv": jax.random.normal(ks[2], (D, D), jnp.float32) * scale,
        "wo": jax.random.normal(ks[3], (D, D), jnp.float32) * scale,
        "we": jax.random.normal(ks[4], (E, 1), jnp.float32) * scale,
        "adj_scale": jnp.full((1, 1), 0.5, jnp.float32),
        "coor_scale": jnp.full((1, 1), 0.1, jnp.float32),
        "w1": jax.random.normal(ks[5], (D, H), jnp.float32) * scale,
        "b1": jnp.zeros((1, H), jnp.float32),
        "w2": jax.random.normal(ks[6], (H, D), jnp.float32) * scale,
        "b2": jnp.zeros((1, D), jnp.float32),
    }


if __name__ == "__main__":
    B, N, D, E, H = 2, 16, 32, 4, 64

    key = jax.random.PRNGKey(0)
    k_feats, k_coors, k_edges, k_adj = jax.random.split(key, 4)

    feats = jax.random.normal(k_feats, (B, N, D), jnp.float32)
    coors = jax.random.normal(k_coors, (B, N, 3), jnp.float32)
    edges = jax.random.normal(k_edges, (B, N, N, E), jnp.float32)
    adj_mat = jax.random.bernoulli(k_adj, 0.5, (B, N, N))
    # variable-length mask: graph 0 fully valid, graph 1 has 11 valid nodes
    lengths = jnp.array([N, 11])
    mask = jnp.arange(N)[None, :] < lengths[:, None]          # (B, N) bool

    params = init_params(D, E, H)

    out = block_forward((feats, coors, mask, edges, adj_mat), params)
    out = jax.block_until_ready(out)

    f_out, c_out, m_out, e_out, a_out = out
    assert f_out.shape == (B, N, D) and c_out.shape == (B, N, 3)
    assert m_out.shape == (B, N) and e_out.shape == (B, N, N, E)
    assert a_out.shape == (B, N, N)
    assert bool(jnp.all(jnp.isfinite(f_out.astype(jnp.float32))))
    assert bool(jnp.all(jnp.isfinite(c_out)))

    print("KERNEL_OK")
</pallas_src>

<mosaic_0001>
module attributes {stable_mosaic.version = 11 : i64} {
  func.func @_block_kernel(%arg0: i32, %arg1: memref<16x32xbf16, #tpu.memory_space<vmem>>, %arg2: memref<16x8xf32, #tpu.memory_space<vmem>>, %arg3: memref<16x16xbf16, #tpu.memory_space<vmem>>, %arg4: memref<32x32xbf16, #tpu.memory_space<vmem>>, %arg5: memref<32x32xbf16, #tpu.memory_space<vmem>>, %arg6: memref<32x32xbf16, #tpu.memory_space<vmem>>, %arg7: memref<32x32xbf16, #tpu.memory_space<vmem>>, %arg8: memref<32x64xbf16, #tpu.memory_space<vmem>>, %arg9: memref<1x64xf32, #tpu.memory_space<vmem>>, %arg10: memref<64x32xbf16, #tpu.memory_space<vmem>>, %arg11: memref<1x32xf32, #tpu.memory_space<vmem>>, %arg12: memref<1xf32, #tpu.memory_space<smem>>, %arg13: memref<16x32xbf16, #tpu.memory_space<vmem>>, %arg14: memref<16x8xf32, #tpu.memory_space<vmem>>) attributes {dimension_semantics = [#tpu.dimension_semantics<parallel>], iteration_bounds = array<i64: 2>, scalar_prefetch = 0 : i64, scratch_operands = 0 : i64, tpu.core_type = #tpu.core_type<tc>, window_params = [{transform_indices = @transform_0, window_bounds = array<i64: 16, 32>}, {transform_indices = @transform_1, window_bounds = array<i64: 16, 8>}, {transform_indices = @transform_2, window_bounds = array<i64: 16, 16>}, {pipeline_mode = #tpu.pipeline_mode<synchronous>, transform_indices = @transform_3, window_bounds = array<i64: 32, 32>}, {pipeline_mode = #tpu.pipeline_mode<synchronous>, transform_indices = @transform_4, window_bounds = array<i64: 32, 32>}, {pipeline_mode = #tpu.pipeline_mode<synchronous>, transform_indices = @transform_5, window_bounds = array<i64: 32, 32>}, {pipeline_mode = #tpu.pipeline_mode<synchronous>, transform_indices = @transform_6, window_bounds = array<i64: 32, 32>}, {pipeline_mode = #tpu.pipeline_mode<synchronous>, transform_indices = @transform_7, window_bounds = array<i64: 32, 64>}, {pipeline_mode = #tpu.pipeline_mode<synchronous>, transform_indices = @transform_8, window_bounds = array<i64: 1, 64>}, {pipeline_mode = #tpu.pipeline_mode<synchronous>, transform_indices = @transform_9, window_bounds = array<i64: 64, 32>}, {pipeline_mode = #tpu.pipeline_mode<synchronous>, transform_indices = @transform_10, window_bounds = array<i64: 1, 32>}, {transform_indices = @transform_11, window_bounds = array<i64: 1>}, {transform_indices = @transform_12, window_bounds = array<i64: 16, 32>}, {transform_indices = @transform_13, window_bounds = array<i64: 16, 8>}]} {
    %c0 = arith.constant 0 : index
    %0 = memref.load %arg12[%c0] : memref<1xf32, #tpu.memory_space<smem>>
    %c0_0 = arith.constant 0 : index
    %c0_1 = arith.constant 0 : index
    %1 = vector.load %arg1[%c0_0, %c0_1] : memref<16x32xbf16, #tpu.memory_space<vmem>>, vector<16x32xbf16>
    %c0_2 = arith.constant 0 : index
    %c0_3 = arith.constant 0 : index
    %2 = vector.load %arg4[%c0_2, %c0_3] : memref<32x32xbf16, #tpu.memory_space<vmem>>, vector<32x32xbf16>
    %cst = arith.constant dense<0.000000e+00> : vector<16x32xf32>
    %3 = tpu.matmul %1, %2, %cst {dimension_numbers = #tpu.dot_dimension_numbers<[1], [0], [0], [1], [0, 0, 1, 1], [], []>} : vector<16x32xbf16>, vector<32x32xbf16>, vector<16x32xf32> -> vector<16x32xf32>
    %4 = arith.truncf %3 : vector<16x32xf32> to vector<16x32xbf16>
    %c0_4 = arith.constant 0 : index
    %c0_5 = arith.constant 0 : index
    %5 = vector.load %arg5[%c0_4, %c0_5] : memref<32x32xbf16, #tpu.memory_space<vmem>>, vector<32x32xbf16>
    %cst_6 = arith.constant dense<0.000000e+00> : vector<16x32xf32>
    %6 = tpu.matmul %1, %5, %cst_6 {dimension_numbers = #tpu.dot_dimension_numbers<[1], [0], [0], [1], [0, 0, 1, 1], [], []>} : vector<16x32xbf16>, vector<32x32xbf16>, vector<16x32xf32> -> vector<16x32xf32>
    %7 = arith.truncf %6 : vector<16x32xf32> to vector<16x32xbf16>
    %c0_7 = arith.constant 0 : index
    %c0_8 = arith.constant 0 : index
    %8 = vector.load %arg6[%c0_7, %c0_8] : memref<32x32xbf16, #tpu.memory_space<vmem>>, vector<32x32xbf16>
    %cst_9 = arith.constant dense<0.000000e+00> : vector<16x32xf32>
    %9 = tpu.matmul %1, %8, %cst_9 {dimension_numbers = #tpu.dot_dimension_numbers<[1], [0], [0], [1], [0, 0, 1, 1], [], []>} : vector<16x32xbf16>, vector<32x32xbf16>, vector<16x32xf32> -> vector<16x32xf32>
    %10 = arith.truncf %9 : vector<16x32xf32> to vector<16x32xbf16>
    %cst_10 = arith.constant dense<0.000000e+00> : vector<16x16xf32>
    %11 = tpu.matmul %4, %7, %cst_10 {dimension_numbers = #tpu.dot_dimension_numbers<[1], [1], [0], [0], [0, 0, 1, 0], [], []>} : vector<16x32xbf16>, vector<16x32xbf16>, vector<16x16xf32> -> vector<16x16xf32>
    %c0_11 = arith.constant 0 : index
    %c0_12 = arith.constant 0 : index
    %12 = vector.load %arg3[%c0_11, %c0_12] : memref<16x16xbf16, #tpu.memory_space<vmem>>, vector<16x16xbf16>
    %13 = arith.extf %12 : vector<16x16xbf16> to vector<16x16xf32>
    %14 = arith.addf %11, %13 : vector<16x16xf32>
    %cst_13 = arith.constant dense<0xFF800000> : vector<16xf32>
    %15 = vector.multi_reduction <maximumf>, %14, %cst_13 [1] : vector<16x16xf32> to vector<16xf32>
    %16 = vector.shape_cast %15 : vector<16xf32> to vector<16x1xf32>
    %17 = vector.broadcast %16 : vector<16x1xf32> to vector<16x16xf32>
    %18 = arith.subf %14, %17 : vector<16x16xf32>
    %19 = math.exp %18 : vector<16x16xf32>
    %cst_14 = arith.constant dense<0.000000e+00> : vector<16xf32>
    %20 = vector.multi_reduction <add>, %19, %cst_14 [1] : vector<16x16xf32> to vector<16xf32>
    %21 = vector.shape_cast %20 : vector<16xf32> to vector<16x1xf32>
    %22 = tpu.reciprocal %21 {approx = true} : vector<16x1xf32> -> vector<16x1xf32>
    %23 = vector.broadcast %22 : vector<16x1xf32> to vector<16x16xf32>
    %24 = arith.mulf %19, %23 : vector<16x16xf32>
    %25 = arith.truncf %24 : vector<16x16xf32> to vector<16x16xbf16>
    %cst_15 = arith.constant dense<0.000000e+00> : vector<16x32xf32>
    %26 = tpu.matmul %25, %10, %cst_15 {dimension_numbers = #tpu.dot_dimension_numbers<[1], [0], [0], [1], [0, 0, 1, 1], [], []>} : vector<16x16xbf16>, vector<16x32xbf16>, vector<16x32xf32> -> vector<16x32xf32>
    %27 = arith.truncf %26 : vector<16x32xf32> to vector<16x32xbf16>
    %c0_16 = arith.constant 0 : index
    %c0_17 = arith.constant 0 : index
    %28 = vector.load %arg7[%c0_16, %c0_17] : memref<32x32xbf16, #tpu.memory_space<vmem>>, vector<32x32xbf16>
    %cst_18 = arith.constant dense<0.000000e+00> : vector<16x32xf32>
    %29 = tpu.matmul %27, %28, %cst_18 {dimension_numbers = #tpu.dot_dimension_numbers<[1], [0], [0], [1], [0, 0, 1, 1], [], []>} : vector<16x32xbf16>, vector<32x32xbf16>, vector<16x32xf32> -> vector<16x32xf32>
    %30 = arith.extf %1 : vector<16x32xbf16> to vector<16x32xf32>
    %31 = arith.addf %30, %29 : vector<16x32xf32>
    %c0_19 = arith.constant 0 : index
    %c0_20 = arith.constant 0 : index
    %32 = vector.load %arg2[%c0_19, %c0_20] : memref<16x8xf32, #tpu.memory_space<vmem>>, vector<16x8xf32>
    %cst_21 = arith.constant dense<0.000000e+00> : vector<16x8xf32>
    %33 = tpu.matmul %24, %32, %cst_21 {dimension_numbers = #tpu.dot_dimension_numbers<[1], [0], [0], [1], [0, 0, 1, 1], [], []>} : vector<16x16xf32>, vector<16x8xf32>, vector<16x8xf32> -> vector<16x8xf32>
    %34 = arith.subf %32, %33 : vector<16x8xf32>
    %35 = vector.broadcast %0 : f32 to vector<16x8xf32>
    %36 = arith.mulf %34, %35 : vector<16x8xf32>
    %37 = arith.addf %32, %36 : vector<16x8xf32>
    %c0_22 = arith.constant 0 : index
    %c0_23 = arith.constant 0 : index
    %38 = vector.load %arg14[%c0_22, %c0_23] : memref<16x8xf32, #tpu.memory_space<vmem>>, vector<16x8xf32>
    tpu.vector_store %arg14[%c0_22, %c0_23], %37 {strides = array<i32>} : memref<16x8xf32, #tpu.memory_space<vmem>>, vector<16x8xf32>,
    %39 = arith.truncf %31 : vector<16x32xf32> to vector<16x32xbf16>
    %c0_24 = arith.constant 0 : index
    %c0_25 = arith.constant 0 : index
    %40 = vector.load %arg8[%c0_24, %c0_25] : memref<32x64xbf16, #tpu.memory_space<vmem>>, vector<32x64xbf16>
    %cst_26 = arith.constant dense<0.000000e+00> : vector<16x64xf32>
    %41 = tpu.matmul %39, %40, %cst_26 {dimension_numbers = #tpu.dot_dimension_numbers<[1], [0], [0], [1], [0, 0, 1, 1], [], []>} : vector<16x32xbf16>, vector<32x64xbf16>, vector<16x64xf32> -> vector<16x64xf32>
    %c0_27 = arith.constant 0 : index
    %c0_28 = arith.constant 0 : index
    %42 = vector.load %arg9[%c0_27, %c0_28] : memref<1x64xf32, #tpu.memory_space<vmem>>, vector<1x64xf32>
    %43 = vector.broadcast %42 : vector<1x64xf32> to vector<16x64xf32>
    %44 = arith.addf %41, %43 : vector<16x64xf32>
    %45 = arith.mulf %44, %44 : vector<16x64xf32>
    %46 = arith.mulf %44, %45 : vector<16x64xf32>
    %cst_29 = arith.constant 4.471500e-02 : f32
    %47 = vector.broadcast %cst_29 : f32 to vector<16x64xf32>
    %48 = arith.mulf %47, %46 : vector<16x64xf32>
    %49 = arith.addf %44, %48 : vector<16x64xf32>
    %cst_30 = arith.constant 0.797884583 : f32
    %50 = vector.broadcast %cst_30 : f32 to vector<16x64xf32>
    %51 = arith.mulf %50, %49 : vector<16x64xf32>
    %52 = math.tanh %51 : vector<16x64xf32>
    %cst_31 = arith.constant 1.000000e+00 : f32
    %53 = vector.broadcast %cst_31 : f32 to vector<16x64xf32>
    %54 = arith.addf %53, %52 : vector<16x64xf32>
    %cst_32 = arith.constant 5.000000e-01 : f32
    %55 = vector.broadcast %cst_32 : f32 to vector<16x64xf32>
    %56 = arith.mulf %55, %54 : vector<16x64xf32>
    %57 = arith.mulf %44, %56 : vector<16x64xf32>
    %58 = arith.truncf %57 : vector<16x64xf32> to vector<16x64xbf16>
    %c0_33 = arith.constant 0 : index
    %c0_34 = arith.constant 0 : index
    %59 = vector.load %arg10[%c0_33, %c0_34] : memref<64x32xbf16, #tpu.memory_space<vmem>>, vector<64x32xbf16>
    %cst_35 = arith.constant dense<0.000000e+00> : vector<16x32xf32>
    %60 = tpu.matmul %58, %59, %cst_35 {dimension_numbers = #tpu.dot_dimension_numbers<[1], [0], [0], [1], [0, 0, 1, 1], [], []>} : vector<16x64xbf16>, vector<64x32xbf16>, vector<16x32xf32> -> vector<16x32xf32>
    %c0_36 = arith.constant 0 : index
    %c0_37 = arith.constant 0 : index
    %61 = vector.load %arg11[%c0_36, %c0_37] : memref<1x32xf32, #tpu.memory_space<vmem>>, vector<1x32xf32>
    %62 = vector.broadcast %61 : vector<1x32xf32> to vector<16x32xf32>
    %63 = arith.addf %60, %62 : vector<16x32xf32>
    %64 = arith.addf %31, %63 : vector<16x32xf32>
    %65 = arith.truncf %64 : vector<16x32xf32> to vector<16x32xbf16>
    %c0_38 = arith.constant 0 : index
    %c0_39 = arith.constant 0 : index
    %66 = vector.load %arg13[%c0_38, %c0_39] : memref<16x32xbf16, #tpu.memory_space<vmem>>, vector<16x32xbf16>
    tpu.vector_store %arg13[%c0_38, %c0_39], %65 {strides = array<i32>} : memref<16x32xbf16, #tpu.memory_space<vmem>>, vector<16x32xbf16>,
    return
  }
  func.func @transform_0(%arg0: i32) -> (i32, i32) {
    %c0_i32 = arith.constant 0 : i32
    %c0_i32_0 = arith.constant 0 : i32
    return %arg0, %c0_i32 : i32, i32
  }
  func.func @transform_1(%arg0: i32) -> (i32, i32) {
    %c0_i32 = arith.constant 0 : i32
    %c0_i32_0 = arith.constant 0 : i32
    return %arg0, %c0_i32 : i32, i32
  }
  func.func @transform_2(%arg0: i32) -> (i32, i32) {
    %c0_i32 = arith.constant 0 : i32
    %c0_i32_0 = arith.constant 0 : i32
    return %arg0, %c0_i32 : i32, i32
  }
  func.func @transform_3(%arg0: i32) -> (i32, i32) {
    %c0_i32 = arith.constant 0 : i32
    %c0_i32_0 = arith.constant 0 : i32
    %c0_i32_1 = arith.constant 0 : i32
    return %c0_i32, %c0_i32_0 : i32, i32
  }
  func.func @transform_4(%arg0: i32) -> (i32, i32) {
    %c0_i32 = arith.constant 0 : i32
    %c0_i32_0 = arith.constant 0 : i32
    %c0_i32_1 = arith.constant 0 : i32
    return %c0_i32, %c0_i32_0 : i32, i32
  }
  func.func @transform_5(%arg0: i32) -> (i32, i32) {
    %c0_i32 = arith.constant 0 : i32
    %c0_i32_0 = arith.constant 0 : i32
    %c0_i32_1 = arith.constant 0 : i32
    return %c0_i32, %c0_i32_0 : i32, i32
  }
  func.func @transform_6(%arg0: i32) -> (i32, i32) {
    %c0_i32 = arith.constant 0 : i32
    %c0_i32_0 = arith.constant 0 : i32
    %c0_i32_1 = arith.constant 0 : i32
    return %c0_i32, %c0_i32_0 : i32, i32
  }
  func.func @transform_7(%arg0: i32) -> (i32, i32) {
    %c0_i32 = arith.constant 0 : i32
    %c0_i32_0 = arith.constant 0 : i32
    %c0_i32_1 = arith.constant 0 : i32
    return %c0_i32, %c0_i32_0 : i32, i32
  }
  func.func @transform_8(%arg0: i32) -> (i32, i32) {
    %c0_i32 = arith.constant 0 : i32
    %c0_i32_0 = arith.constant 0 : i32
    %c0_i32_1 = arith.constant 0 : i32
    return %c0_i32, %c0_i32_0 : i32, i32
  }
  func.func @transform_9(%arg0: i32) -> (i32, i32) {
    %c0_i32 = arith.constant 0 : i32
    %c0_i32_0 = arith.constant 0 : i32
    %c0_i32_1 = arith.constant 0 : i32
    return %c0_i32, %c0_i32_0 : i32, i32
  }
  func.func @transform_10(%arg0: i32) -> (i32, i32) {
    %c0_i32 = arith.constant 0 : i32
    %c0_i32_0 = arith.constant 0 : i32
    %c0_i32_1 = arith.constant 0 : i32
    return %c0_i32, %c0_i32_0 : i32, i32
  }
  func.func @transform_11(%arg0: i32) -> i32 {
    %c0_i32 = arith.constant 0 : i32
    %c0_i32_0 = arith.constant 0 : i32
    return %c0_i32 : i32
  }
  func.func @transform_12(%arg0: i32) -> (i32, i32) {
    %c0_i32 = arith.constant 0 : i32
    %c0_i32_0 = arith.constant 0 : i32
    return %arg0, %c0_i32 : i32, i32
  }
  func.func @transform_13(%arg0: i32) -> (i32, i32) {
    %c0_i32 = arith.constant 0 : i32
    %c0_i32_0 = arith.constant 0 : i32
    return %arg0, %c0_i32 : i32, i32
  }
}

</mosaic_0001>

<bundles_post_ra>
// kernel: tpu_custom_call.1
= control target key start
LH: loop header
LB: loop body
LE: loop exit
PB: predicated region body
PF: predicated region fallthrough
CT: control target
= control target key end

     0   :  { %s1870_s0 = inlined_call_operand.vmem [shape: bf16[32,32], index: 0, kind: input, shape index: {}]   ;;  %s1871_s1 = inlined_call_operand.vmem [shape: f32[32,8], index: 1, kind: input, shape index: {}]   ;;  %s1872_s2 = inlined_call_operand.vmem [shape: bf16[32,16], index: 2, kind: input, shape index: {}]   ;;  %s1873_s3 = inlined_call_operand.vmem [shape: bf16[32,32], index: 3, kind: input, shape index: {}]   ;;  %s1874_s4 = inlined_call_operand.vmem [shape: bf16[32,32], index: 4, kind: input, shape index: {}]   ;;  %s1875_s5 = inlined_call_operand.vmem [shape: bf16[32,32], index: 5, kind: input, shape index: {}]   ;;  %s1876_s6 = inlined_call_operand.vmem [shape: bf16[32,32], index: 6, kind: input, shape index: {}]   ;;  %s1877_s7 = inlined_call_operand.vmem [shape: bf16[32,64], index: 7, kind: input, shape index: {}]   ;;  %s1878_s8 = inlined_call_operand.vmem [shape: f32[1,64], index: 8, kind: input, shape index: {}]   ;;  %s1879_s9 = inlined_call_operand.vmem [shape: bf16[64,32], index: 9, kind: input, shape index: {}]   ;;  %s1880_s10 = inlined_call_operand.vmem [shape: f32[1,32], index: 10, kind: input, shape index: {}]   ;;  %s1881_s11 = inlined_call_operand.<no memory space> [shape: f32[1], index: 11, kind: input, shape index: {}]   ;;  %s1882_s12 = inlined_call_operand.hbm [shape: bf16[32,32], index: 12, kind: output, shape index: {0}]   ;;  %s1883_s13 = inlined_call_operand.vmem [shape: f32[32,8], index: 13, kind: output, shape index: {1}]  }
   0x1   :  { %1884 = sst [smem:[#allocation6_spill]] %s1870_s0 }
   0x2   :  { %1885 = sst [smem:[#allocation7_spill]] %s1871_s1 }
   0x3   :  { %19 = sst [smem:[#allocation2]] %s1881_s11 }
   0x4   :  { %20 = vsyncpa [#allocation4], 0 }
   0x5   :  { %22 = vsyncpa [#allocation4 + $0x1], 0  ;;  %s1647_s27 = smov 0   ;;  %s1649_s28 = smov 0  }
   0x6   :  { %s1651_s29 = smov 0   ;;  %s1653_s30 = smov 0  }
   0x7 LB: > { %s1668_s11 = sadd.s32 4294967295, %s1567_s30   ;;  %s1283_s14 = sadd.s32 4294967294, %s1567_s30   ;;  %s1567_s30 = sphi %s1653_s30, %s1893_s30   ;;  %s1563_s29 = sphi %s1651_s29, %s1892_s29   ;;  %s1559_s28 = sphi %s1649_s28, %s1891_s28   ;;  %s1555_s27 = sphi %s1647_s27, %s1890_s27  }
   0x8   : > { %s1672_s15 = sadd.s32 1, %s1567_s30   ;;  %s302_s16 = sadd.s32 1, %s1563_s29 }
   0x9   : > { %s299_s17 = ssub.s32 %s1567_s30, %s1672_s15  ;;  %p312_p0 = scmp.ne.s32.totalorder %s1563_s29, %s1559_s28 }
   0xa   : > { %p300_p1 = scmp.eq.s32.totalorder %s299_s17, 0  ;;  %p313_p2 = scmp.eq.s32.totalorder %s1668_s11, 1 }
   0xb   : > { %p318_p3 = scmp.ne.s32.totalorder %s1559_s28, %s1555_s27  ;;  %p319_p4 = scmp.eq.s32.totalorder %s1283_s14, 1 }
   0xc   : > { %s1683_s18 = scalar_select %p300_p1, %s1563_s29, %s302_s16  }
   0xd   : > { %p1685_p5 = por %p313_p2, %p312_p0  ;;  %p1689_p6 = por %p319_p4, %p318_p3 }
   0xe   : > { %p1286_p7 = scmp.ge.s32.totalorder %s1567_s30, 1  ;;  %p417_p8 = scmp.lt.s32.totalorder %s1567_s30, 3 }
  0x10   : > { %p418_p9 = pnand %p1286_p7, %p417_p8 }
  0x11   : > { %s1288_s25 = sshll.u32 (!%p418_p9), %s1668_s11, 1  ;;  %s1888_s0 = sld [smem:[#allocation6_spill]] (!%p418_p9) }
  0x12   : > { %421 = sbr.rel (%p418_p9) target bundleno = 1608 (0x648), region = 68  ;;  %p477_p10 = scmp.lt.s32.totalorder (!%p418_p9), %s1288_s25, 3 }
  0x13   : > { %s1889_s1 = sld [smem:[#allocation7_spill]] (!%p418_p9) }
  0x14   : > { %s502_s14 = sld [smem:[#allocation2]] (!%p418_p9) }
  0x17   : > { %v1479_v0 = vld [vmem:[%s1873_s3 + $0x8] sm:$0xff]   ;;  %v1569_v1 = vmov 0.0   ;;  %v1480_v2 = vld [vmem:[%s1873_s3] sm:$0xff]   ;;  %vm1570_vm0 = vmmov 0   ;;  %s1895_s25 = smov (!%p477_p10, %s1288_s25), 3  ;;  %vm526_vm1 = vcmask 261120  }
  0x18   : > { %1365 = vmatprep.subr.bf16.mxu1 %v1569_v1  ;;  %1381 = vmatprep.subr.bf16.mxu0 %v1569_v1  ;;  %s1289_s26 = sshll.u32 %s1895_s25, 2  ;;  %v1482_v3 = vld [vmem:[%s1874_s4 + $0x8] sm:$0xff]   ;;  %v1483_v5 = vld [vmem:[%s1874_s4] sm:$0xff]   ;;  %vm739_vm2 = vcmask 130048   ;;  %vm962_vm3 = vcmask 64512   ;;  %vm1091_vm4 = vcmask 523264  }
  0x19   : > { %1366 = vmatpush3.bf16.msra.mxu1 %v1479_v0  ;;  %1369 = vmatprep.mubr.msk.bf16.mxu1 %vm1570_vm0, %v1569_v1  ;;  %s480_s22 = scalar_lea.vmem %s1888_s0, %s1289_s26  ;;  %v1484_v17 = vld [vmem:[%s1875_s5 + $0x8] sm:$0xff]   ;;  %v1485_v18 = vld [vmem:[%s1875_s5] sm:$0xff]   ;;  %s492_s24 = scalar_lea.vmem %s1872_s2, %s1289_s26  ;;  %vm1146_vm5 = vcmask 257024  }
  0x1a   : > { %1367 = vmatprep.subr.bf16.mxu1 %v1569_v1  ;;  %1385 = vmatprep.mubr.msk.bf16.mxu0 %vm1570_vm0, %v1569_v1  ;;  %v1721_v4 = vld [vmem:[%s480_s22] sm:$0xff]   ;;  %s1291_s26 = sshll.u32 %s1895_s25, 3  ;;  %v1486_v54 = vld [vmem:[%s1876_s6 + $0x8] sm:$0xff]   ;;  %v957_v63 = vstv %s502_s14  ;;  %s1332_s22 = sshll.u32 %s1668_s11, 7 }
  0x1b   : > { %1382 = vmatpush3.bf16.msra.mxu0 %v1484_v17  ;;  %v1334_v19 = vld [vmem:[%s492_s24] sm:$0xff]   ;;  %s486_s17 = scalar_lea.vmem %s1889_s1, %s1291_s26  ;;  %s499_s21 = scalar_lea.vmem %s1883_s13, %s1291_s26 }
  0x1c   : > { %1383 = vmatprep.subr.bf16.mxu0 %v1569_v1  ;;  %v1335_v20 = vunpack.c.l.bf16 %v1334_v19  ;;  %v1336_v23 = vunpack.c.h.bf16 %v1334_v19  ;;  %v873_v45 = vld [vmem:[%s486_s17 + $0x8] sm:$0xff]  ;;  %v872_v53 = vld [vmem:[%s486_s17] sm:$0xff]  ;;  %v1490_v19 = vld [vmem:[%s1879_s9 + $0x18] sm:$0xff]   ;;  %s466_s26 = sand.u32 1, %s1559_s28   ;;  %s1826_s16 = scalar_lea.hbm %s1882_s12, %s1332_s22 }
  0x1d   : > { %1368 = vmatpush3.bf16.msra.mxu1 %v1480_v2  ;;  %v1487_v55 = vld [vmem:[%s1876_s6] sm:$0xff]   ;;  %s1830_s17 = scalar_lea.sflag [#allocation4], %s466_s26 }
  0x1e   : > { %1373 = vmatprep.subr.bf16.mxu1 %v1569_v1 }
  0x1f   : > { %1384 = vmatpush3.bf16.msra.mxu0 %v1485_v18 }
  0x20   : > { %1370 = vmatmul.mubr.msk.bf16.vlgmr.msra.gmra.mxu1 %vm526_vm1, %v1721_v4  ;;  %1395 = vmatprep.subr.bf16.mxu0 %v1569_v1 }
  0x21   : > { %1374 = vmatpush3.bf16.msra.mxu1 %v1482_v3  ;;  %1377 = vmatprep.mubr.msk.bf16.mxu1 %vm1570_vm0, %v1569_v1 }
  0x22   : > { %1375 = vmatprep.subr.bf16.mxu1 %v1569_v1  ;;  %1386 = vmatmul.mubr.msk.bf16.vlgmr.msra.gmra.mxu0 %vm526_vm1, %v1721_v4 }
  0x23   : > { %1397 = vmatprep.mubr.msk.bf16.mxu0 %vm1570_vm0, %v1569_v1 }
  0x25   : > { %1376 = vmatpush3.bf16.msra.mxu1 %v1483_v5 }
  0x26   : > { %1389 = vmatprep.subr.bf16.mxu1 %v1569_v1 }
  0x28   : > { %1378 = vmatmul.mubr.msk.bf16.vlgmr.msra.gmra.mxu1 %vm526_vm1, %v1721_v4 }
  0x29   : > { %1391 = vmatprep.mubr.msk.bf16.mxu1 %vm1570_vm0, %v1569_v1 }
  0xe0   : > { %v564_v6 = vpop.f32.mrf.mxu1 }
  0xe2   : > { %v1371_v7 = vpop.f32.mrf.mxu1  ;;  %v680_v40 = vpop.f32.mrf.mxu0 }
  0xe4   : > { %v567_v8 = vpop.f32.mrf.mxu1  ;;  %v1387_v41 = vpop.f32.mrf.mxu0 }
  0xe5   : > { %v571_v16 = vpack.c.bf16 %v567_v8, %v564_v6  ;;  %v1488_v8 = vld [vmem:[%s1877_s7 + $0x8] sm:$0xff]  }
  0xe6   : > { %v1372_v9 = vpop.f32.mrf.mxu1  ;;  %v683_v42 = vpop.f32.mrf.mxu0 }
  0xe7   : > { %v687_v44 = vpack.c.bf16 %v683_v42, %v680_v40  ;;  %v1489_v9 = vld [vmem:[%s1877_s7] sm:$0xff]  }
  0xe8   : > { %v622_v10 = vpop.f32.mrf.mxu1  ;;  %v1388_v43 = vpop.f32.mrf.mxu0 }
  0xe9   : > { %1396 = vmatpush3.bf16.msra.mxu0 %v687_v44 }
  0xea   : > { %v1379_v11 = vpop.f32.mrf.mxu1  ;;  %1409 = vmatprep.subr.mxu0 %v873_v45 }
  0xeb   : > { %v868_v11 = vunpack.c.l.bf16 %v1721_v4 }
  0xec   : > { %v625_v12 = vpop.f32.mrf.mxu1 }
  0xed   : > { %v629_v13 = vpack.c.bf16 %v625_v12, %v622_v10  ;;  %v869_v12 = vunpack.c.h.bf16 %v1721_v4  ;;  %v1492_v4 = vld [vmem:[%s1879_s9 + $0x8] sm:$0xff]  }
  0xee   : > { %v1380_v14 = vpop.f32.mrf.mxu1 }
  0xef   : > { %v696_v15 = vsel %vm526_vm1, %v629_v13, 0 }
  0xf0   : > { %1390 = vmatpush3.bf16.xpose.msra.mxu1 %v696_v15 }
  0xf1   : > { %1401 = vmatprep.subr.bf16.mxu1 %v1569_v1 }
  0xf7   : > { %1392 = vmatmul.mubr.msk.bf16.vlgmr.msra.gmra.mxu1 %vm526_vm1, %v571_v16 }
  0xf8   : > { %1405 = vmatprep.mubr.msk.bf16.mxu1 %vm1570_vm0, %v1569_v1  ;;  %1402 = vmatpush3.bf16.msra.mxu1 %v1486_v54 }
  0xf9   : > { %1403 = vmatprep.subr.bf16.mxu1 %v1569_v1 }
  0xfc   : > { %1404 = vmatpush3.bf16.msra.mxu1 %v1487_v55 }
  0xfd   : > { %1416 = vmatprep.subr.bf16.mxu1 %v1569_v1 }
 0x1b7   : > { %v732_v21 = vpop.f32.mrf.mxu1 }
 0x1b8   : > { %v733_v22 = vadd.f32 %v1335_v20, %v732_v21  ;;  %v1491_v20 = vld [vmem:[%s1879_s9 + $0x10] sm:$0xff]   ;;  %v1493_v21 = vld [vmem:[%s1879_s9] sm:$0xff]  }
 0x1b9   : > { %v1393_v24 = vpop.f32.mrf.mxu1 }
 0x1ba   : > { %v740_v25 = vsel %vm739_vm2, %v733_v22, -inf }
 0x1bb   : > { %741 = vmax.xlane.f32.xlu0 %v740_v25  ;;  %v735_v26 = vpop.f32.mrf.mxu1 }
 0x1bc   : > { %v736_v27 = vadd.f32 %v1336_v23, %v735_v26 }
 0x1bd   : > { %v1394_v28 = vpop.f32.mrf.mxu1 }
 0x1be   : > { %v743_v29 = vsel %vm739_vm2, %v736_v27, -inf }
 0x1bf   : > { %744 = vmax.xlane.f32.xlu0 %v743_v29 }
 0x244   : > { %v742_v30 = vpop.xlane.xlu0 %741 }
 0x245   : > { %v746_v31 = vsub.f32 %v733_v22, %v742_v30  ;;  %v1313_v22 = vld [vmem:[%s1878_s8] ss:$0 sm:$0xff] }
 0x247   : > { %v748_v32 = vmul.f32 1.442695, %v746_v31 }
 0x248   : > { %v745_v33 = vpop.xlane.xlu0 %744 }
 0x249   : > { %1495 = vpow2.f32 %v748_v32  ;;  %v747_v34 = vsub.f32 %v736_v27, %v745_v33 }
 0x24b   : > { %v750_v35 = vmul.f32 1.442695, %v747_v34 }
 0x24d   : > { %1497 = vpow2.f32 %v750_v35 }
 0x256   : > { %v1496_v36 = vpop.eup %1495 }
 0x257   : > { %v752_v37 = vsel %vm739_vm2, %v1496_v36, 0.0 }
 0x258   : > { %753 = vadd.xlane.f32.xlu1 %v752_v37 }
 0x25a   : > { %v1498_v38 = vpop.eup %1497 }
 0x25b   : > { %v755_v39 = vsel %vm739_vm2, %v1498_v38, 0.0 }
 0x25c   : > { %756 = vadd.xlane.f32.xlu1 %v755_v39 }
 0x2e1   : > { %v754_v46 = vpop.xlane.xlu1 %753 }
 0x2e2   : > { %1499 = vrcp.f32 %v754_v46 }
 0x2e5   : > { %v757_v47 = vpop.xlane.xlu1 %756 }
 0x2e6   : > { %1501 = vrcp.f32 %v757_v47  ;;  %v1317_v47 = vld [vmem:[%s1880_s10] ss:$0 sm:$0xff] }
 0x2ef   : > { %v1500_v48 = vpop.eup %1499 }
 0x2f0   : > { %v760_v51 = vmul.f32 %v1500_v48, %v1496_v36 }
 0x2f3   : > { %v1502_v49 = vpop.eup %1501 }
 0x2f4   : > { %v761_v50 = vmul.f32 %v1502_v49, %v1498_v38 }
 0x2f6   : > { %v762_v52 = vpack.c.bf16 %v761_v50, %v760_v51 }
 0x2f8   : > { %1398 = vmatmul.mubr.msk.bf16.vlgmr.msra.gmra.mxu0 %vm739_vm2, %v762_v52 }
 0x2f9   : > { %1413 = vmatprep.mubr.msk.f32.mxu0 %vm739_vm2, %v760_v51  ;;  %1410 = vmatpush3.msra.mxu0 %v873_v45 }
 0x2fa   : > { %1411 = vmatprep.subr.mxu0 %v872_v53 }
 0x2fb   : > { %1412 = vmatpush3.msra.mxu0 %v872_v53 }
 0x2fc   : > { %1424 = vmatprep.subr.bf16.mxu0 %v1569_v1 }
 0x300   : > { %1414 = vmatmul.mubr.msk.f32.vlgmr.msra.gmra.mxu0 %vm739_vm2, %v761_v50 }
 0x301   : > { %1432 = vmatprep.mubr.msk.bf16.mxu0 %vm1570_vm0, %v1569_v1  ;;  %1425 = vmatpush3.bf16.msra.mxu0 %v1490_v19 }
 0x302   : > { %1426 = vmatprep.subr.bf16.mxu0 %v1569_v1 }
 0x305   : > { %1427 = vmatpush3.bf16.msra.mxu0 %v1491_v20 }
 0x306   : > { %1428 = vmatprep.subr.bf16.mxu0 %v1569_v1 }
 0x309   : > { %1429 = vmatpush3.bf16.msra.mxu0 %v1492_v4 }
 0x30a   : > { %1430 = vmatprep.subr.bf16.mxu0 %v1569_v1 }
 0x30d   : > { %1431 = vmatpush3.bf16.msra.mxu0 %v1493_v21 }
 0x3b8   : > { %v800_v56 = vpop.f32.mrf.mxu0 }
 0x3ba   : > { %v1399_v57 = vpop.f32.mrf.mxu0 }
 0x3bc   : > { %v803_v58 = vpop.f32.mrf.mxu0 }
 0x3bd   : > { %v807_v59 = vpack.c.bf16 %v803_v58, %v800_v56 }
 0x3be   : > { %v1400_v60 = vpop.f32.mrf.mxu0 }
 0x3bf   : > { %1406 = vmatmul.mubr.msk.bf16.vlgmr.msra.gmra.mxu1 %vm526_vm1, %v807_v59 }
 0x3c0   : > { %v1415_v61 = vpop.f32.mrf.mxu0  ;;  %1420 = vmatprep.mubr.msk.bf16.mxu1 %vm1570_vm0, %v1569_v1  ;;  %1417 = vmatpush3.bf16.msra.mxu1 %v1488_v8 }
 0x3c1   : > { %v956_v62 = vsub.f32 %v873_v45, %v1415_v61  ;;  %1418 = vmatprep.subr.bf16.mxu1 %v1569_v1 }
 0x3c2   : > { %v946_v0 = vpop.f32.mrf.mxu0 }
 0x3c3   : > { %v955_v2 = vsub.f32 %v872_v53, %v946_v0  ;;  %v959_v3 = vmul.f32 %v957_v63, %v956_v62 }
 0x3c4   : > { %1419 = vmatpush3.bf16.msra.mxu1 %v1489_v9 }
 0x3c5   : > { %v958_v5 = vmul.f32 %v957_v63, %v955_v2  ;;  %v961_v7 = vadd.f32 %v959_v3, %v873_v45 }
 0x3c7   : > { %v960_v6 = vadd.f32 %v958_v5, %v872_v53  ;;  %964 = vst.msk [vmem:[%s499_s21 + $0x8] sm:$0xff] %vm962_vm3, %v961_v7 }
 0x3c9   : > { %963 = vst.msk [vmem:[%s499_s21] sm:$0xff] %vm962_vm3, %v960_v6  ;;  %s1287_s21 = sshll.u32 %s466_s26, 3 }
 0x3ca   : > { %s468_s23 = scalar_lea.vmem [#allocation3], %s1287_s21  ;;  %s1571_s21 = smov [#allocation3]  }
 0x3cb   : > { %s1168_s24 = sshll.u32 %s468_s23, 4  ;;  %s1511_s0 = sshll.u32 %s1571_s21, 4  ;;  %s1828_s24 = int_to_ptr.vmem [resolvable:$true] %s1168_s24  ;;  %s1512_s0 = int_to_ptr.vmem [resolvable:$false] %s1511_s0 }
 0x3cc   : > { %s1507_s11 = scalar_lea.vmem %s1828_s24, 128  ;;  %s1513_s14 = scalar_lea.vmem %s1512_s0, 256 }
 0x3cd   : > { %p1508_p11 = scmp.ne.s32.totalorder %s1828_s24, %s1507_s11  ;;  %p1514_p0 = scmp.lt.s32.totalorder %s1828_s24, %s1512_s0 }
 0x3ce   : > { %p1515_p1 = scmp.lt.s32.totalorder %s1513_s14, %s1507_s11 }
 0x3cf   : > { %p1509_p12 = pnand %p1508_p11, %p1685_p5 }
 0x3d0   : > { %p1516_p2 = por %p1515_p1, %p1514_p0 }
 0x3d1   : > { %p1510_p13 = pneg %p1509_p12 }
 0x3d3   : > { %p1517_p3 = pnand %p1516_p2, %p1510_p13 }
 0x47f   : > { %v861_v10 = vpop.f32.mrf.mxu1 }
 0x480   : > { %v870_v15 = vadd.f32 %v868_v11, %v861_v10 }
 0x481   : > { %v1407_v13 = vpop.f32.mrf.mxu1 }
 0x483   : > { %v864_v14 = vpop.f32.mrf.mxu1 }
 0x484   : > { %v871_v16 = vadd.f32 %v869_v12, %v864_v14 }
 0x485   : > { %v1408_v17 = vpop.f32.mrf.mxu1 }
 0x486   : > { %v965_v18 = vpack.c.bf16 %v871_v16, %v870_v15 }
 0x488   : > { %1421 = vmatmul.mubr.msk.bf16.vlgmr.msra.gmra.mxu1 %vm526_vm1, %v965_v18 }
 0x548   : > { %v1026_v23 = vpop.f32.mrf.mxu1 }
 0x549   : > { %v1027_v24 = vadd.f32 %v1313_v22, %v1026_v23 }
 0x54a   : > { %v1422_v25 = vpop.f32.mrf.mxu1 }
 0x54b   : > { %v1033_v26 = vmul.f32 %v1027_v24, %v1027_v24 }
 0x54c   : > { %v1029_v27 = vpop.f32.mrf.mxu1 }
 0x54d   : > { %v1035_v28 = vmul.f32 %v1033_v26, %v1027_v24  ;;  %v1030_v29 = vadd.f32 %v1313_v22, %v1029_v27 }
 0x54e   : > { %v1423_v30 = vpop.f32.mrf.mxu1 }
 0x54f   : > { %v1037_v31 = vmul.f32 0.044715, %v1035_v28  ;;  %v1034_v32 = vmul.f32 %v1030_v29, %v1030_v29 }
 0x551   : > { %v1039_v1 = vadd.f32 %v1037_v31, %v1027_v24  ;;  %v1036_v33 = vmul.f32 %v1034_v32, %v1030_v29 }
 0x553   : > { %v1041_v34 = vmul.f32 0.7978846, %v1039_v1  ;;  %v1038_v35 = vmul.f32 0.044715, %v1036_v33 }
 0x555   : > { %1503 = vtanh.f32 %v1041_v34  ;;  %v1040_v36 = vadd.f32 %v1038_v35, %v1030_v29 }
 0x557   : > { %v1042_v37 = vmul.f32 0.7978846, %v1040_v36 }
 0x559   : > { %1505 = vtanh.f32 %v1042_v37 }
 0x562   : > { %v1504_v38 = vpop.eup %1503 }
 0x563   : > { %v1045_v39 = vadd.f32 1.0, %v1504_v38 }
 0x565   : > { %v1047_v41 = vmul.f32 0.5, %v1045_v39 }
 0x566   : > { %v1506_v40 = vpop.eup %1505 }
 0x567   : > { %v1046_v42 = vadd.f32 1.0, %v1506_v40  ;;  %v1049_v44 = vmul.f32 %v1047_v41, %v1027_v24 }
 0x569   : > { %v1048_v43 = vmul.f32 0.5, %v1046_v42 }
 0x56b   : > { %v1050_v45 = vmul.f32 %v1048_v43, %v1030_v29 }
 0x56d   : > { %v1051_v46 = vpack.c.bf16 %v1050_v45, %v1049_v44 }
 0x56f   : > { %1433 = vmatmul.mubr.msk.bf16.vlgmr.msra.gmra.mxu0 %vm1091_vm4, %v1051_v46 }
 0x62f   : > { %v1129_v48 = vpop.f32.mrf.mxu0 }
 0x630   : > { %v1130_v49 = vadd.f32 %v1317_v47, %v1129_v48 }
 0x631   : > { %v1434_v50 = vpop.f32.mrf.mxu0 }
 0x632   : > { %v1136_v51 = vadd.f32 %v1130_v49, %v870_v15 }
 0x633   : > { %v1132_v52 = vpop.f32.mrf.mxu0 }
 0x634   : > { %v1330_v53 = vpack.c.bf16 %v1136_v51, %v1136_v51  ;;  %v1133_v54 = vadd.f32 %v1317_v47, %v1132_v52 }
 0x635   : > { %v1435_v55 = vpop.f32.mrf.mxu0 }
 0x636   : > { %1147 = vst.msk [vmem:[%s468_s23] sm:$0xf] %vm1146_vm5, %v1330_v53  ;;  %v1137_v56 = vadd.f32 %v1133_v54, %v871_v16 }
 0x638   : > { %v1331_v57 = vpack.c.bf16 %v1137_v56, %v1137_v56 }
 0x63a   : > { %1148 = vst.msk [vmem:[%s468_s23 + $0x4] sm:$0xf] %vm1146_vm5, %v1331_v57 }
 0x63b   : > { %1520 = shalt.err (!%p1517_p3)
}
 0x63c   : > { %s1521_s26 = scalar_lea.hbm %s1826_s16, 128  ;;  %s1525_s25 = scalar_lea.hbm %s1882_s12, 256 }
 0x63d   : > { %p1522_p4 = scmp.ne.s32.totalorder %s1826_s16, %s1521_s26  ;;  %p1526_p9 = scmp.lt.s32.totalorder %s1826_s16, %s1882_s12 }
 0x63e   : > { %p1527_p10 = scmp.lt.s32.totalorder %s1525_s25, %s1521_s26 }
 0x63f   : > { %p1523_p7 = pnand %p1522_p4, %p1685_p5 }
 0x640   : > { %p1528_p11 = por %p1527_p10, %p1526_p9 }
 0x641   : > { %p1524_p8 = pneg %p1523_p7 }
 0x643   : > { %p1529_p12 = pnand %p1528_p11, %p1524_p8 }
 0x645   : > { %1532 = shalt.err (!%p1529_p12)
}
 0x646   : > { %s1572_s0 = smov 64   ;;  %s1573_s11 = smov 4  }
 0x647   : > { %1436 = dma.vmem_to_hbm [thread:$0]  (%p1685_p5), %s1828_s24, 128, %s1826_s16, %s1830_s17, %s1572_s0, %s1572_s0, %s1573_s11  }
 0x648 PF: > { %p1442_p13 = scmp.ge.s32.totalorder %s1567_s30, 2  ;;  %s1187_s14 = sand.u32 1, %s1555_s27  }
 0x649   : > { %s1188_s1 = scalar_lea.sflag [#allocation4], %s1187_s14 }
 0x64a   : > { %p1439_p0 = pnand %p1442_p13, %p1689_p6 }
 0x64c   : > { %p1440_p1 = pneg %p1439_p0 }
 0x64e   : > { %1550 = dma.done.wait (%p1440_p1), %s1188_s1, 128  }
 0x64f   : > { %1552 = vsyncadd (%p1440_p1), %s1188_s1, 4294967168  ;;  %p25_p2 = scmp.ge.s32.totalorder %s1672_s15, 4   ;;  %s1890_s27 = smov %s1559_s28 }
 0x650   : > { %s1891_s28 = smov %s1563_s29  ;;  %s1892_s29 = smov %s1683_s18 }
 0x651   : > { %s1893_s30 = smov %s1672_s15  ;;  %27 = sbr.rel (!%p25_p2) target bundleno = 7 (0x7), region = 121 }
 0x656   :  { %1201 = vsyncpa [#allocation4], 1 }
 0x657   :  { %1203 = vsyncpa [#allocation4 + $0x1], 1 }

</bundles_post_ra>
